<compile_context>
chip_gen: v6e
topology: v6e:2x2x1
jax: 0.10.0
libtpu: 0.0.40
codegen_flags: <defaults>
</compile_context>

<pallas_src>
import functools

import jax
import jax.numpy as jnp
from jax import lax
from jax.experimental import pallas as pl
from jax.experimental.pallas import tpu as pltpu


def _round_up(x, m):
    return (x + m - 1) // m * m


def _invariant_spec(shape, index_map):
    """BlockSpec for a grid-invariant input; single-buffered when supported."""
    try:
        return pl.BlockSpec(shape, index_map, pipeline_mode=pl.Buffered(1))
    except Exception:  # pipeline_mode / Buffered unavailable -> default spec.
        return pl.BlockSpec(shape, index_map)


def _vmem_capacity_bytes():
    try:
        return int(pltpu.get_tpu_info().vmem_capacity_bytes)
    except Exception:  # no TPU visible (e.g. interpret mode): conservative v7x per-core.
        return 64 * 1024 * 1024


def _triplet_batch_hard_kernel(a_ref, bt_ref, row_sq_ref, col_sq_ref,
                               row_lab_ref, col_lab_ref, out_ref, gram_ref,
                               *, margin, batch, tm, nk):
    # Grid coordinates are read ONLY at the top level of the kernel body
    # (never inside pl.when bodies) so interpret-mode lowering stays happy.
    i = pl.program_id(0)
    k = pl.program_id(1)
    row_base = i * tm

    # Partial Gram rows for this (row tile, D-chunk) on the MXU:
    # bf16 [tm, tk] @ bf16 [tk, b_pad] -> f32 [tm, b_pad].
    part = jnp.dot(a_ref[...], bt_ref[...], preferred_element_type=jnp.float32)

    @pl.when(k == 0)
    def _():                       # first chunk: plain store (no zero + RMW)
        gram_ref[...] = part

    @pl.when(k > 0)
    def _():                       # later chunks: accumulate
        gram_ref[...] += part

    @pl.when(k == nk - 1)
    def _():                       # epilogue: masks + hardest pos/neg + loss
        bp = gram_ref.shape[1]
        gram = gram_ref[...]
        # Squared pairwise distances for this anchor-row tile (f32 combine).
        d2 = jnp.maximum(row_sq_ref[...] - 2.0 * gram + col_sq_ref[...], 0.0)

        rows = row_base + lax.broadcasted_iota(jnp.int32, (tm, bp), 0)
        cols = lax.broadcasted_iota(jnp.int32, (tm, bp), 1)
        not_eye = rows != cols
        col_valid = cols < batch                       # mask out padded columns
        lab_eq = row_lab_ref[...] == col_lab_ref[...]  # (tm,1)==(1,bp) -> (tm,bp)

        mask_pos = not_eye & lab_eq & col_valid
        mask_neg = not_eye & jnp.logical_not(lab_eq) & col_valid

        # Hardest positive / negative selected on *squared* distances.
        hardest_pos_d2 = jnp.max(jnp.where(mask_pos, d2, 0.0),
                                 axis=1, keepdims=True)                 # (tm,1)
        hardest_neg_d2 = jnp.min(jnp.where(mask_neg, d2, jnp.float32(1e30)),
                                 axis=1, keepdims=True)                 # (tm,1)
        # TODO(synk): for very large batches, chunk these reductions over the
        # lane axis with running accumulators to bound the (tm, b_pad) live set.

        def _safe_sqrt(x):          # reference's zero fixup, deferred to (tm,1)
            zero = x == 0.0
            return jnp.where(zero, 0.0, jnp.sqrt(jnp.where(zero, 1e-16, x)))

        trip = jnp.maximum(
            _safe_sqrt(hardest_pos_d2) - _safe_sqrt(hardest_neg_d2) + margin, 0.0)
        row_ids = row_base + lax.broadcasted_iota(jnp.int32, (tm, 1), 0)
        out_ref[...] = jnp.where(row_ids < batch, trip, 0.0)   # zero padded rows


def triplet_loss_batch_hard(embeddings, labels, margin=1.0):
    """embeddings: (B, D) float, labels: (B,) int -> scalar float32 loss."""
    B, D = embeddings.shape
    emb32 = jnp.asarray(embeddings, jnp.float32)
    lab = jnp.asarray(labels, jnp.int32)

    # ---- row tiling: keep >= 2 row tiles whenever B > 16 (v7x megacore) ------
    if B <= 16:
        tm = _round_up(B, 8)
        b_pad = tm
    elif B <= 256:
        tm = _round_up(_round_up(B, 16) // 2, 8)
        b_pad = 2 * tm
    else:
        tm = 256 if B >= 2048 else 128
        b_pad = _round_up(B, tm)
    n_rows = b_pad // tm

    d_pad = _round_up(D, 128)

    # ---- per-core VMEM budget -> resident batch slab, or D-chunk fallback ----
    vmem_cap = _vmem_capacity_bytes()
    plan_budget = int(0.75 * vmem_cap)
    resident_est = (d_pad * b_pad * 2          # bf16 [K,N] slab, single buffer
                    + 2 * tm * d_pad * 2       # bf16 anchor tiles, double-buffered
                    + tm * b_pad * 4           # f32 Gram scratch
                    + 8 * tm * b_pad * 4)      # epilogue temporaries headroom
    resident = resident_est <= plan_budget
    if resident:
        tk = d_pad
    else:
        tk = 512 if d_pad > 512 else d_pad
        d_pad = _round_up(d_pad, tk)
    n_k = d_pad // tk

    # ---- padded operands: bf16 MXU operands, f32 norms / labels --------------
    emb_p = jnp.zeros((b_pad, d_pad), jnp.float32).at[:B, :D].set(emb32)
    emb_bf = emb_p.astype(jnp.bfloat16)                       # [M, K] rows
    emb_bf_t = emb_bf.T                                       # [K, N] slab (RHS)
    sq_col = jnp.sum(emb_bf.astype(jnp.float32) ** 2, axis=1, keepdims=True)
    sq_row = sq_col.reshape(1, b_pad)
    lab_col = jnp.full((b_pad, 1), -1, jnp.int32).at[:B, 0].set(lab)
    lab_row = lab_col.reshape(1, b_pad)

    est = (resident_est if resident else
           (2 * tk * b_pad * 2 + 2 * tm * tk * 2 + tm * b_pad * 4
            + 8 * tm * b_pad * 4))
    vmem_limit = int(min(0.9 * vmem_cap, max(32 * 1024 * 1024, 1.25 * est)))

    if resident:
        bt_spec = _invariant_spec((tk, b_pad), lambda i, k: (0, 0))
    else:
        bt_spec = pl.BlockSpec((tk, b_pad), lambda i, k: (k, 0))

    per_row = pl.pallas_call(
        functools.partial(_triplet_batch_hard_kernel,
                          margin=float(margin), batch=B, tm=tm, nk=n_k),
        out_shape=jax.ShapeDtypeStruct((b_pad, 1), jnp.float32),
        grid=(n_rows, n_k),
        in_specs=[
            pl.BlockSpec((tm, tk), lambda i, k: (i, k)),       # anchor-row tile
            bt_spec,                                           # [K, N] batch slab
            pl.BlockSpec((tm, 1), lambda i, k: (i, 0)),        # row sq-norms
            _invariant_spec((1, b_pad), lambda i, k: (0, 0)),  # col sq-norms
            pl.BlockSpec((tm, 1), lambda i, k: (i, 0)),        # row labels
            _invariant_spec((1, b_pad), lambda i, k: (0, 0)),  # col labels
        ],
        out_specs=pl.BlockSpec((tm, 1), lambda i, k: (i, 0)),
        scratch_shapes=[pltpu.VMEM((tm, b_pad), jnp.float32)],
        compiler_params=pltpu.CompilerParams(
            dimension_semantics=("parallel", "arbitrary"),
            vmem_limit_bytes=vmem_limit),
    )(emb_bf, emb_bf_t, sq_col, sq_row, lab_col, lab_row)

    return jnp.sum(per_row) / jnp.float32(B)


if __name__ == "__main__":
    key = jax.random.PRNGKey(0)
    k_emb, k_lab = jax.random.split(key)

    B, D = 8, 32
    embeddings = jax.random.normal(k_emb, (B, D), dtype=jnp.float32)
    labels = jax.random.randint(k_lab, (B,), 0, 3, dtype=jnp.int32)

    loss = triplet_loss_batch_hard(embeddings, labels, margin=1.0)
    jax.block_until_ready(loss)
    print("KERNEL_OK")
</pallas_src>

<mosaic_0001>
module attributes {stable_mosaic.version = 11 : i64} {
  func.func @_triplet_batch_hard_kernel(%arg0: i32, %arg1: i32, %arg2: memref<8x128xbf16, #tpu.memory_space<vmem>>, %arg3: memref<128x8xbf16, #tpu.memory_space<vmem>>, %arg4: memref<8x1xf32, #tpu.memory_space<vmem>>, %arg5: memref<1x8xf32, #tpu.memory_space<vmem>>, %arg6: memref<8x1xi32, #tpu.memory_space<vmem>>, %arg7: memref<1x8xi32, #tpu.memory_space<vmem>>, %arg8: memref<8x1xf32, #tpu.memory_space<vmem>>, %arg9: memref<8x8xf32, #tpu.memory_space<vmem>>) attributes {dimension_semantics = [#tpu.dimension_semantics<parallel>, #tpu.dimension_semantics<arbitrary>], iteration_bounds = array<i64: 1, 1>, scalar_prefetch = 0 : i64, scratch_operands = 1 : i64, tpu.core_type = #tpu.core_type<tc>, window_params = [{transform_indices = @transform_0, window_bounds = array<i64: 8, 128>}, {pipeline_mode = #tpu.pipeline_mode<synchronous>, transform_indices = @transform_1, window_bounds = array<i64: 128, 8>}, {transform_indices = @transform_2, window_bounds = array<i64: 8, 1>}, {pipeline_mode = #tpu.pipeline_mode<synchronous>, transform_indices = @transform_3, window_bounds = array<i64: 1, 8>}, {transform_indices = @transform_4, window_bounds = array<i64: 8, 1>}, {pipeline_mode = #tpu.pipeline_mode<synchronous>, transform_indices = @transform_5, window_bounds = array<i64: 1, 8>}, {transform_indices = @transform_6, window_bounds = array<i64: 8, 1>}]} {
    %c8_i32 = arith.constant 8 : i32
    %0 = arith.muli %arg0, %c8_i32 : i32
    %c0 = arith.constant 0 : index
    %c0_0 = arith.constant 0 : index
    %1 = vector.load %arg2[%c0, %c0_0] : memref<8x128xbf16, #tpu.memory_space<vmem>>, vector<8x128xbf16>
    %c0_1 = arith.constant 0 : index
    %c0_2 = arith.constant 0 : index
    %2 = vector.load %arg3[%c0_1, %c0_2] : memref<128x8xbf16, #tpu.memory_space<vmem>>, vector<128x8xbf16>
    %cst = arith.constant dense<0.000000e+00> : vector<8x8xf32>
    %3 = tpu.matmul %1, %2, %cst {dimension_numbers = #tpu.dot_dimension_numbers<[1], [0], [0], [1], [0, 0, 1, 1], [], []>} : vector<8x128xbf16>, vector<128x8xbf16>, vector<8x8xf32> -> vector<8x8xf32>
    %c0_i32 = arith.constant 0 : i32
    %4 = arith.cmpi eq, %arg1, %c0_i32 : i32
    %5 = arith.extui %4 : i1 to i32
    %c0_i32_3 = arith.constant 0 : i32
    %6 = arith.cmpi ne, %5, %c0_i32_3 : i32
    scf.if %6 {
      %c0_8 = arith.constant 0 : index
      %c0_9 = arith.constant 0 : index
      %13 = vector.load %arg9[%c0_8, %c0_9] : memref<8x8xf32, #tpu.memory_space<vmem>>, vector<8x8xf32>
      tpu.vector_store %arg9[%c0_8, %c0_9], %3 {strides = array<i32>} : memref<8x8xf32, #tpu.memory_space<vmem>>, vector<8x8xf32>,
    } else {
    }
    %c0_i32_4 = arith.constant 0 : i32
    %7 = arith.cmpi sgt, %arg1, %c0_i32_4 : i32
    %8 = arith.extui %7 : i1 to i32
    %c0_i32_5 = arith.constant 0 : i32
    %9 = arith.cmpi ne, %8, %c0_i32_5 : i32
    scf.if %9 {
      %c0_8 = arith.constant 0 : index
      %c0_9 = arith.constant 0 : index
      %13 = vector.load %arg9[%c0_8, %c0_9] : memref<8x8xf32, #tpu.memory_space<vmem>>, vector<8x8xf32>
      %14 = arith.addf %13, %3 : vector<8x8xf32>
      %c0_10 = arith.constant 0 : index
      %c0_11 = arith.constant 0 : index
      %15 = vector.load %arg9[%c0_10, %c0_11] : memref<8x8xf32, #tpu.memory_space<vmem>>, vector<8x8xf32>
      tpu.vector_store %arg9[%c0_10, %c0_11], %14 {strides = array<i32>} : memref<8x8xf32, #tpu.memory_space<vmem>>, vector<8x8xf32>,
    } else {
    }
    %c0_i32_6 = arith.constant 0 : i32
    %10 = arith.cmpi eq, %arg1, %c0_i32_6 : i32
    %11 = arith.extui %10 : i1 to i32
    %c0_i32_7 = arith.constant 0 : i32
    %12 = arith.cmpi ne, %11, %c0_i32_7 : i32
    scf.if %12 {
      %c0_8 = arith.constant 0 : index
      %c0_9 = arith.constant 0 : index
      %13 = vector.load %arg9[%c0_8, %c0_9] : memref<8x8xf32, #tpu.memory_space<vmem>>, vector<8x8xf32>
      %c0_10 = arith.constant 0 : index
      %c0_11 = arith.constant 0 : index
      %14 = vector.load %arg4[%c0_10, %c0_11] : memref<8x1xf32, #tpu.memory_space<vmem>>, vector<8x1xf32>
      %cst_12 = arith.constant 2.000000e+00 : f32
      %15 = vector.broadcast %cst_12 : f32 to vector<8x8xf32>
      %16 = arith.mulf %15, %13 : vector<8x8xf32>
      %17 = vector.broadcast %14 : vector<8x1xf32> to vector<8x8xf32>
      %18 = arith.subf %17, %16 : vector<8x8xf32>
      %c0_13 = arith.constant 0 : index
      %c0_14 = arith.constant 0 : index
      %19 = vector.load %arg5[%c0_13, %c0_14] : memref<1x8xf32, #tpu.memory_space<vmem>>, vector<1x8xf32>
      %20 = vector.broadcast %19 : vector<1x8xf32> to vector<8x8xf32>
      %21 = arith.addf %18, %20 : vector<8x8xf32>
      %cst_15 = arith.constant 0.000000e+00 : f32
      %22 = vector.broadcast %cst_15 : f32 to vector<8x8xf32>
      %23 = arith.maximumf %21, %22 : vector<8x8xf32>
      %24 = tpu.iota {dimensions = array<i32: 0>} : vector<8x8xi32>
      %25 = vector.broadcast %0 : i32 to vector<8x8xi32>
      %26 = arith.addi %25, %24 : vector<8x8xi32>
      %27 = tpu.iota {dimensions = array<i32: 1>} : vector<8x8xi32>
      %28 = arith.cmpi ne, %26, %27 : vector<8x8xi32>
      %c8_i32_16 = arith.constant 8 : i32
      %29 = vector.broadcast %c8_i32_16 : i32 to vector<8x8xi32>
      %30 = arith.cmpi slt, %27, %29 : vector<8x8xi32>
      %c0_17 = arith.constant 0 : index
      %c0_18 = arith.constant 0 : index
      %31 = vector.load %arg6[%c0_17, %c0_18] : memref<8x1xi32, #tpu.memory_space<vmem>>, vector<8x1xi32>
      %c0_19 = arith.constant 0 : index
      %c0_20 = arith.constant 0 : index
      %32 = vector.load %arg7[%c0_19, %c0_20] : memref<1x8xi32, #tpu.memory_space<vmem>>, vector<1x8xi32>
      %33 = vector.broadcast %31 : vector<8x1xi32> to vector<8x8xi32>
      %34 = vector.broadcast %32 : vector<1x8xi32> to vector<8x8xi32>
      %35 = arith.cmpi eq, %33, %34 : vector<8x8xi32>
      %36 = arith.andi %28, %35 : vector<8x8xi1>
      %37 = arith.andi %36, %30 : vector<8x8xi1>
      %cst_21 = arith.constant dense<true> : vector<8x8xi1>
      %38 = arith.xori %35, %cst_21 : vector<8x8xi1>
      %39 = arith.andi %28, %38 : vector<8x8xi1>
      %40 = arith.andi %39, %30 : vector<8x8xi1>
      %cst_22 = arith.constant 0.000000e+00 : f32
      %41 = vector.broadcast %cst_22 : f32 to vector<8x8xf32>
      %42 = arith.select %37, %23, %41 : vector<8x8xi1>, vector<8x8xf32>
      %cst_23 = arith.constant dense<0xFF800000> : vector<8xf32>
      %43 = vector.multi_reduction <maximumf>, %42, %cst_23 [1] : vector<8x8xf32> to vector<8xf32>
      %44 = vector.shape_cast %43 : vector<8xf32> to vector<8x1xf32>
      %cst_24 = arith.constant 1.000000e+30 : f32
      %45 = vector.broadcast %cst_24 : f32 to vector<8x8xf32>
      %46 = arith.select %40, %23, %45 : vector<8x8xi1>, vector<8x8xf32>
      %cst_25 = arith.constant dense<0x7F800000> : vector<8xf32>
      %47 = vector.multi_reduction <minimumf>, %46, %cst_25 [1] : vector<8x8xf32> to vector<8xf32>
      %48 = vector.shape_cast %47 : vector<8xf32> to vector<8x1xf32>
      %cst_26 = arith.constant 0.000000e+00 : f32
      %49 = vector.broadcast %cst_26 : f32 to vector<8x1xf32>
      %50 = arith.cmpf oeq, %44, %49 : vector<8x1xf32>
      %cst_27 = arith.constant 1.000000e-16 : f32
      %51 = vector.broadcast %cst_27 : f32 to vector<8x1xf32>
      %52 = arith.select %50, %51, %44 : vector<8x1xi1>, vector<8x1xf32>
      %53 = math.sqrt %52 : vector<8x1xf32>
      %cst_28 = arith.constant 0.000000e+00 : f32
      %54 = vector.broadcast %cst_28 : f32 to vector<8x1xf32>
      %55 = arith.select %50, %54, %53 : vector<8x1xi1>, vector<8x1xf32>
      %cst_29 = arith.constant 0.000000e+00 : f32
      %56 = vector.broadcast %cst_29 : f32 to vector<8x1xf32>
      %57 = arith.cmpf oeq, %48, %56 : vector<8x1xf32>
      %cst_30 = arith.constant 1.000000e-16 : f32
      %58 = vector.broadcast %cst_30 : f32 to vector<8x1xf32>
      %59 = arith.select %57, %58, %48 : vector<8x1xi1>, vector<8x1xf32>
      %60 = math.sqrt %59 : vector<8x1xf32>
      %cst_31 = arith.constant 0.000000e+00 : f32
      %61 = vector.broadcast %cst_31 : f32 to vector<8x1xf32>
      %62 = arith.select %57, %61, %60 : vector<8x1xi1>, vector<8x1xf32>
      %63 = arith.subf %55, %62 : vector<8x1xf32>
      %cst_32 = arith.constant 1.000000e+00 : f32
      %64 = vector.broadcast %cst_32 : f32 to vector<8x1xf32>
      %65 = arith.addf %63, %64 : vector<8x1xf32>
      %cst_33 = arith.constant 0.000000e+00 : f32
      %66 = vector.broadcast %cst_33 : f32 to vector<8x1xf32>
      %67 = arith.maximumf %65, %66 : vector<8x1xf32>
      %68 = tpu.iota {dimensions = array<i32: 0>} : vector<8x1xi32>
      %69 = vector.broadcast %0 : i32 to vector<8x1xi32>
      %70 = arith.addi %69, %68 : vector<8x1xi32>
      %c8_i32_34 = arith.constant 8 : i32
      %71 = vector.broadcast %c8_i32_34 : i32 to vector<8x1xi32>
      %72 = arith.cmpi slt, %70, %71 : vector<8x1xi32>
      %cst_35 = arith.constant 0.000000e+00 : f32
      %73 = vector.broadcast %cst_35 : f32 to vector<8x1xf32>
      %74 = arith.select %72, %67, %73 : vector<8x1xi1>, vector<8x1xf32>
      %c0_36 = arith.constant 0 : index
      %c0_37 = arith.constant 0 : index
      %75 = vector.load %arg8[%c0_36, %c0_37] : memref<8x1xf32, #tpu.memory_space<vmem>>, vector<8x1xf32>
      tpu.vector_store %arg8[%c0_36, %c0_37], %74 {strides = array<i32>} : memref<8x1xf32, #tpu.memory_space<vmem>>, vector<8x1xf32>,
    } else {
    }
    return
  }
  func.func @transform_0(%arg0: i32, %arg1: i32) -> (i32, i32) {
    %c0_i32 = arith.constant 0 : i32
    return %arg0, %arg1 : i32, i32
  }
  func.func @transform_1(%arg0: i32, %arg1: i32) -> (i32, i32) {
    %c0_i32 = arith.constant 0 : i32
    %c0_i32_0 = arith.constant 0 : i32
    %c0_i32_1 = arith.constant 0 : i32
    return %c0_i32, %c0_i32_0 : i32, i32
  }
  func.func @transform_2(%arg0: i32, %arg1: i32) -> (i32, i32) {
    %c0_i32 = arith.constant 0 : i32
    %c0_i32_0 = arith.constant 0 : i32
    return %arg0, %c0_i32 : i32, i32
  }
  func.func @transform_3(%arg0: i32, %arg1: i32) -> (i32, i32) {
    %c0_i32 = arith.constant 0 : i32
    %c0_i32_0 = arith.constant 0 : i32
    %c0_i32_1 = arith.constant 0 : i32
    return %c0_i32, %c0_i32_0 : i32, i32
  }
  func.func @transform_4(%arg0: i32, %arg1: i32) -> (i32, i32) {
    %c0_i32 = arith.constant 0 : i32
    %c0_i32_0 = arith.constant 0 : i32
    return %arg0, %c0_i32 : i32, i32
  }
  func.func @transform_5(%arg0: i32, %arg1: i32) -> (i32, i32) {
    %c0_i32 = arith.constant 0 : i32
    %c0_i32_0 = arith.constant 0 : i32
    %c0_i32_1 = arith.constant 0 : i32
    return %c0_i32, %c0_i32_0 : i32, i32
  }
  func.func @transform_6(%arg0: i32, %arg1: i32) -> (i32, i32) {
    %c0_i32 = arith.constant 0 : i32
    %c0_i32_0 = arith.constant 0 : i32
    return %arg0, %c0_i32 : i32, i32
  }
}

</mosaic_0001>

<bundles_post_ra>
// kernel: tpu_custom_call.1
= control target key start
LH: loop header
LB: loop body
LE: loop exit
PB: predicated region body
PF: predicated region fallthrough
CT: control target
= control target key end

     0   :  { %v284_v0 = vmov 0.0   ;;  %vm285_vm0 = vmmov 0   ;;  %v286_v2 = vmov 0   ;;  %vm134_vm1 = vcmask 64512   ;;  %s372_s1 = inlined_call_operand.vmem [shape: bf16[128,8], index: 1, kind: input, shape index: {}]   ;;  %s373_s2 = inlined_call_operand.vmem [shape: f32[8,1], index: 2, kind: input, shape index: {}]   ;;  %s374_s4 = inlined_call_operand.vmem [shape: s32[8,1], index: 4, kind: input, shape index: {}]   ;;  %s375_s0 = inlined_call_operand.vmem [shape: bf16[8,128], index: 0, kind: input, shape index: {}]   ;;  %s376_s5 = inlined_call_operand.vmem [shape: s32[1,8], index: 5, kind: input, shape index: {}]   ;;  %s377_s3 = inlined_call_operand.vmem [shape: f32[1,8], index: 3, kind: input, shape index: {}]   ;;  %s378_s6 = inlined_call_operand.vmem [shape: f32[8,1], index: 6, kind: output, shape index: {}]  }
   0x1   :  { %247 = vmatprep.subr.bf16.mxu0 %v284_v0  ;;  %v272_v1 = vld [vmem:[%s372_s1 + $0x38] sm:$0xff]   ;;  %263 = vmatprep.mubr.msk.bf16.mxu0 %vm285_vm0, %v284_v0  ;;  %v273_v3 = vld [vmem:[%s372_s1 + $0x30] sm:$0xff]   ;;  %v274_v4 = vld [vmem:[%s372_s1 + $0x28] sm:$0xff]   ;;  %v165_v16 = vlaneseq  ;;  %vm287_vm4 = vmmov 1  }
   0x2   :  { %271 = vset.pattern.permute.xlu0 %v286_v2  ;;  %248 = vmatpush3.bf16.msra.mxu0 %v272_v1  ;;  %v148_v5 = vld [vmem:[%s373_s2] sm:$0xff]  ;;  %v276_v8 = vld [vmem:[%s372_s1 + $0x18] sm:$0xff]   ;;  %v277_v9 = vld [vmem:[%s372_s1 + $0x10] sm:$0xff]  }
   0x3   :  { %249 = vmatprep.subr.bf16.mxu0 %v284_v0  ;;  %152 = vperm.xlu0 %271, %v148_v5   ;;  %v275_v6 = vld [vmem:[%s372_s1 + $0x20] sm:$0xff]   ;;  %v278_v10 = vld [vmem:[%s372_s1 + $0x8] sm:$0xff]   ;;  %v166_v19 = vshrl.u32 %v165_v16, 7  ;;  %v170_v20 = vand.u32 127, %v165_v16 }
   0x4   :  { %v173_v7 = vld [vmem:[%s374_s4] sm:$0xff] }
   0x5   :  { %v279_v11 = vld [vmem:[%s372_s1] sm:$0xff]   ;;  %vm171_vm3 = vcmp.ne.s32.totalorder %v166_v19, %v170_v20  ;;  %vm172_vm7 = vcmp.lt.s32.totalorder %v170_v20, 8 }
   0x6   :  { %250 = vmatpush3.bf16.msra.mxu0 %v273_v3  ;;  %v25_v12 = vld [vmem:[%s375_s0] sm:$0xf] }
   0x7   :  { %251 = vmatprep.subr.bf16.mxu0 %v284_v0  ;;  %176 = vperm.xlu0 %271, %v173_v7   ;;  %v237_v21 = vld [vmem:[%s376_s5] ss:$0 sm:$0xff] }
   0x8   :  { %v236_v25 = vld [vmem:[%s377_s3] ss:$0 sm:$0xff] }
   0xa   :  { %252 = vmatpush3.bf16.msra.mxu0 %v274_v4 }
   0xb   :  { %253 = vmatprep.subr.bf16.mxu0 %v284_v0 }
   0xe   :  { %254 = vmatpush3.bf16.msra.mxu0 %v275_v6 }
   0xf   :  { %255 = vmatprep.subr.bf16.mxu0 %v284_v0 }
  0x12   :  { %256 = vmatpush3.bf16.msra.mxu0 %v276_v8 }
  0x13   :  { %257 = vmatprep.subr.bf16.mxu0 %v284_v0 }
  0x16   :  { %258 = vmatpush3.bf16.msra.mxu0 %v277_v9 }
  0x17   :  { %259 = vmatprep.subr.bf16.mxu0 %v284_v0 }
  0x1a   :  { %260 = vmatpush3.bf16.msra.mxu0 %v278_v10 }
  0x1b   :  { %261 = vmatprep.subr.bf16.mxu0 %v284_v0 }
  0x1e   :  { %262 = vmatpush3.bf16.msra.mxu0 %v279_v11 }
  0x21   :  { %264 = vmatmul.mubr.bf16.vlgmr.msra.gmra.mxu0 %v25_v12 }
  0x7e   :  { %v153_v14 = vpop.permute.xlu0 %152 }
  0x82   :  { %v177_v22 = vpop.permute.xlu0 %176 }
  0x83   :  { %vm182_vm2 = vcmp.eq.s32.totalorder %v177_v22, %v237_v21 }
  0x84   :  { %vm185_vm5 = vmxor %vm182_vm2, %vm287_vm4 }
  0x85   :  { %vm183_vm6 = vmand %vm171_vm3, %vm182_vm2 }
  0x86   :  { %vm186_vm8 = vmand %vm171_vm3, %vm185_vm5 }
  0x87   :  { %vm184_vm9 = vmand %vm183_vm6, %vm172_vm7 }
  0x88   :  { %vm187_vm10 = vmand %vm186_vm8, %vm172_vm7 }
  0xe1   :  { %v124_v13 = vpop.f32.mrf.mxu0 }
  0xe2   :  { %135 = vst.msk [vmem:[#allocation2] sm:$0xff] %vm134_vm1, %v124_v13 }
  0xe3   :  { %v265_v15 = vpop.f32.mrf.mxu0 }
  0xe5   :  { %v127_v17 = vpop.f32.mrf.mxu0 }
  0xe7   :  { %v266_v18 = vpop.f32.mrf.mxu0 }
  0xe9   :  { %v147_v23 = vld [vmem:[#allocation2] sm:$0xff] }
  0xea   :  { %v149_v24 = vmul.f32 2.0, %v147_v23 }
  0xec   :  { %v155_v26 = vsub.f32 %v153_v14, %v149_v24 }
  0xee   :  { %v163_v27 = vadd.f32 %v236_v25, %v155_v26 }
  0xf0   :  { %v164_v28 = vmax.f32 %v163_v27, 0.0 }
  0xf2   :  { %v188_v29 = vsel %vm184_vm9, %v164_v28, 0.0  ;;  %v193_v31 = vsel %vm187_vm10, %v164_v28, 1e+30 }
  0xf3   :  { %v190_v30 = vsel %vm134_vm1, %v188_v29, -inf  ;;  %v194_v32 = vsel %vm134_vm1, %v193_v31, inf  ;;  %vm222_vm1 = vcmask 7168  }
  0xf4   :  { %191 = vmax.xlane.f32.xlu1 %v190_v30 }
  0xf8   :  { %195 = vmin.xlane.f32.xlu1 %v194_v32 }
 0x17d   :  { %v192_v33 = vpop.xlane.xlu1 %191 }
 0x17e   :  { %vm197_vm11 = vcmp.eq.f32.partialorder %v192_v33, 0.0 }
 0x17f   :  { %v198_v34 = vsel %vm197_vm11, 1e-16, %v192_v33 }
 0x180   :  { %280 = vrsqrt.f32 %v198_v34  ;;  %vm201_vm13 = vcmp.eq.f32.partialorder %v198_v34, inf  ;;  %v204_v41 = vand.u32 2147483648, %v198_v34  ;;  %vm203_vm14 = vcmp.eq.f32.partialorder %v198_v34, 0.0 }
 0x181   :  { %v196_v35 = vpop.xlane.xlu1 %195 }
 0x182   :  { %vm207_vm12 = vcmp.eq.f32.partialorder %v196_v35, 0.0 }
 0x183   :  { %v208_v36 = vsel %vm207_vm12, 1e-16, %v196_v35 }
 0x184   :  { %282 = vrsqrt.f32 %v208_v36  ;;  %vm211_vm15 = vcmp.eq.f32.partialorder %v208_v36, inf  ;;  %v214_v44 = vand.u32 2147483648, %v208_v36  ;;  %vm213_vm0 = vcmp.eq.f32.partialorder %v208_v36, 0.0 }
 0x18d   :  { %v281_v37 = vpop.eup %280 }
 0x18e   :  { %v200_v38 = vmul.f32 %v281_v37, %v198_v34 }
 0x190   :  { %v202_v39 = vsel %vm201_vm13, %v198_v34, %v200_v38 }
 0x191   :  { %v283_v40 = vpop.eup %282  ;;  %v205_v43 = vsel %vm203_vm14, %v204_v41, %v202_v39 }
 0x192   :  { %v210_v42 = vmul.f32 %v283_v40, %v208_v36  ;;  %v206_v47 = vsel %vm197_vm11, 0.0, %v205_v43 }
 0x194   :  { %v212_v45 = vsel %vm211_vm15, %v208_v36, %v210_v42 }
 0x195   :  { %v215_v46 = vsel %vm213_vm0, %v214_v44, %v212_v45 }
 0x196   :  { %v216_v48 = vsel %vm207_vm12, 0.0, %v215_v46 }
 0x197   :  { %v217_v49 = vsub.f32 %v206_v47, %v216_v48 }
 0x199   :  { %v218_v50 = vadd.f32 1.0, %v217_v49 }
 0x19b   :  { %v219_v51 = vmax.f32 %v218_v50, 0.0 }
 0x19d   :  { %223 = vst.msk [vmem:[%s378_s6] sm:$0xff] %vm222_vm1, %v219_v51 }

</bundles_post_ra>
